<compile_context>
chip_gen: v6e
topology: v6e:2x2x1
jax: 0.10.0
libtpu: 0.0.40
codegen_flags: <defaults>
</compile_context>

<pallas_src>
import jax
import jax.numpy as jnp
from jax.experimental import pallas as pl
from jax.experimental.pallas import tpu as pltpu


# ----------------------------------------------------------------------------- kernels
def _pool_conv_bn_kernel(x_ref, w_ref, scale_ref, shift_ref, z_ref, sums_ref):
    # x_ref:     (TILE_CIN, HW)    input chunk (batch dim squeezed), lane-dense
    # w_ref:     (Cout, CIN_PAD)   full 1x1 conv weight, resident in VMEM
    # scale_ref: (Cout, 1) f32     BN scale with 1/(H*W) folded in
    # shift_ref: (Cout, 1) f32     BN shift
    # z_ref:     (Cout, 1)         per-channel result (post BN+ReLU, output dtype)
    # sums_ref:  (CIN_PAD, 1) f32  scratch of per-channel spatial sums
    k = pl.program_id(1)
    tile_cin = x_ref.shape[0]

    # Spatial sum of this Cin chunk on the VPU/XLU (lane reduction, f32 accum);
    # keeps the MXU free for the conv and avoids a per-step ones constant.
    s = jnp.sum(x_ref[...].astype(jnp.float32), axis=-1, keepdims=True)

    start = k * tile_cin
    if tile_cin % 8 == 0:
        start = pl.multiple_of(start, 8)
    sums_ref[pl.ds(start, tile_cin), :] = s

    @pl.when(k == pl.num_programs(1) - 1)
    def _():
        # Single deferred 1x1 conv: (Cout, Cin) @ (Cin, 1) on the MXU, both
        # operands in x.dtype, f32 accumulation via preferred_element_type.
        pooled = sums_ref[...].astype(w_ref.dtype)
        y = jnp.dot(w_ref[...], pooled, preferred_element_type=jnp.float32)
        # Eval-mode BN (1/(H*W) folded into scale) + ReLU; cast to the output
        # dtype HERE so the big broadcast kernel moves narrow data.
        z = jnp.maximum(y * scale_ref[...] + shift_ref[...], 0.0)
        z_ref[...] = z.astype(z_ref.dtype)


def _broadcast_kernel(z_ref, o_ref):
    # z_ref: (Cout, 1)        already BN+ReLU'd, output dtype (sublane column)
    # o_ref: (Cout, TILE_HW)  lane-dense broadcast tile
    o_ref[...] = jnp.broadcast_to(z_ref[...], o_ref.shape).astype(o_ref.dtype)


# ----------------------------------------------------------------------------- helpers
def _round_up(a, b):
    return ((a + b - 1) // b) * b


def _vmem_block_bytes(rows, cols, itemsize):
    # Conservative (8, 128)-tiled VMEM footprint of one buffer.
    return _round_up(max(rows, 1), 8) * _round_up(max(cols, 1), 128) * itemsize


def _vmem_capacity_bytes():
    try:
        cap = getattr(pltpu.get_tpu_info(), "vmem_capacity_bytes", None)
        if cap:
            return int(cap)
    except Exception:
        pass
    return 64 << 20  # smallest per-TC VMEM (v7x); safe default


def _choose_tile_cin(c_in, row_bytes, budget_bytes):
    """Largest Cin chunk whose single VMEM block fits `budget_bytes`.

    Returns (tile_cin, cin_padded). Prefers divisors of c_in that are multiples
    of 8; if none fits, Cin is zero-padded so a fitting chunk always exists
    (zero channels change neither the pooled sums nor the conv).
    """
    if c_in * row_bytes <= budget_bytes:
        return c_in, c_in
    best = 0
    t = 8
    while t < c_in:
        if c_in % t == 0 and t * row_bytes <= budget_bytes:
            best = t
        t += 8
    if best:
        return best, c_in
    t = max(8, (int(budget_bytes // row_bytes) // 8) * 8)
    t = min(t, c_in)
    return t, _round_up(c_in, t)


# ----------------------------------------------------------------------------- wrapper
def inner_pooling(x, conv_weight, bn_gamma, bn_beta, bn_mean, bn_var, eps=1e-5):
    """x: (N, Cin, H, W) NCHW.  conv_weight: (Cout, Cin) (or (Cout, Cin, 1, 1))."""
    n, c_in, h, w = x.shape
    c_out = conv_weight.shape[0]
    hw = h * w
    x_itemsize = jnp.dtype(x.dtype).itemsize

    # Fold eval-mode BN and the 1/(H*W) pooling factor into per-channel affine
    # (plain JAX, done once), kept as sublane-oriented (Cout, 1) f32 columns.
    scale = bn_gamma.astype(jnp.float32) / jnp.sqrt(bn_var.astype(jnp.float32) + eps)
    shift = bn_beta.astype(jnp.float32) - bn_mean.astype(jnp.float32) * scale
    scale_col = (scale / float(hw)).reshape(c_out, 1)
    shift_col = shift.reshape(c_out, 1)

    # Keep the 1x1 conv weight in the input dtype (halves weight HBM traffic for
    # bf16, native MXU rate on all generations).
    w2 = conv_weight.reshape(c_out, c_in).astype(x.dtype)

    # Flatten spatial dims so the lane axis is H*W.
    x3 = x.reshape(n, c_in, hw)

    # ---------------- VMEM budgeting (headroom under the physical per-TC VMEM)
    vmem_cap = _vmem_capacity_bytes()
    vmem_target = max(vmem_cap - (8 << 20), 32 << 20)

    row_bytes = _round_up(hw, 128) * x_itemsize  # one channel row in VMEM
    est_fixed = (2 * _vmem_block_bytes(c_out, _round_up(c_in, 128), x_itemsize)
                 + _vmem_block_bytes(_round_up(c_in, 128), 1, 4)
                 + 2 * _vmem_block_bytes(c_out, 1, x_itemsize)
                 + 4 * _vmem_block_bytes(c_out, 1, 4)
                 + (2 << 20))
    in_budget = max((vmem_target - est_fixed) // 2, 2 << 20)
    tile_cin, cin_pad = _choose_tile_cin(c_in, row_bytes, in_budget)
    n_chunks = cin_pad // tile_cin

    if cin_pad != c_in:
        # Rare fallback path: zero-pad Cin so the chunking always fits VMEM.
        x3 = jnp.pad(x3, ((0, 0), (0, cin_pad - c_in), (0, 0)))
        w2 = jnp.pad(w2, ((0, 0), (0, cin_pad - c_in)))

    in_block = _vmem_block_bytes(tile_cin, hw, x_itemsize)
    w_block = _vmem_block_bytes(c_out, cin_pad, x_itemsize)
    sums_block = _vmem_block_bytes(cin_pad, 1, 4)
    z_block = _vmem_block_bytes(c_out, 1, x_itemsize)
    aff_block = _vmem_block_bytes(c_out, 1, 4)
    needed1 = (2 * in_block + 2 * w_block + sums_block + 2 * z_block
               + 4 * aff_block + (2 << 20))
    vmem_limit1 = int(min(max(needed1, 16 << 20), vmem_target))

    cost1 = pl.CostEstimate(
        flops=2 * n * (cin_pad * hw + cin_pad * c_out),
        transcendentals=0,
        bytes_accessed=(n * cin_pad * hw * x_itemsize
                        + c_out * cin_pad * x_itemsize
                        + n * c_out * x_itemsize),
    )

    # ---------------- stage 1: global-avg-pool + 1x1 conv + BN + ReLU -> (N, Cout, 1)
    z = pl.pallas_call(
        _pool_conv_bn_kernel,
        out_shape=jax.ShapeDtypeStruct((n, c_out, 1), x.dtype),
        grid_spec=pltpu.PrefetchScalarGridSpec(
            num_scalar_prefetch=0,
            grid=(n, n_chunks),
            in_specs=[
                pl.BlockSpec((pl.Squeezed(), tile_cin, hw), lambda i, k: (i, k, 0)),
                pl.BlockSpec((c_out, cin_pad), lambda i, k: (0, 0)),
                pl.BlockSpec((c_out, 1), lambda i, k: (0, 0)),
                pl.BlockSpec((c_out, 1), lambda i, k: (0, 0)),
            ],
            out_specs=pl.BlockSpec((pl.Squeezed(), c_out, 1), lambda i, k: (i, 0, 0)),
            scratch_shapes=[pltpu.VMEM((cin_pad, 1), jnp.float32)],
        ),
        compiler_params=pltpu.CompilerParams(
            dimension_semantics=("parallel", "arbitrary"),
            vmem_limit_bytes=vmem_limit1,
        ),
        cost_estimate=cost1,
    )(x3, w2, scale_col, shift_col)

    # ---------------- stage 2: lane-dense broadcast store, HW-tiled, fully parallel
    if hw <= 512:
        tile_hw = hw
    else:
        half = (hw + 1) // 2
        tile_hw = min(8192, _round_up(half, 128))
    n_hw_tiles = pl.cdiv(hw, tile_hw)

    out_block = _vmem_block_bytes(c_out, tile_hw, x_itemsize)
    needed2 = 2 * out_block + 2 * z_block + (1 << 20)
    vmem_limit2 = int(min(max(needed2, 16 << 20), vmem_target))

    cost2 = pl.CostEstimate(
        flops=0,
        transcendentals=0,
        bytes_accessed=n * c_out * hw * x_itemsize + n * c_out * x_itemsize,
    )

    out3 = pl.pallas_call(
        _broadcast_kernel,
        out_shape=jax.ShapeDtypeStruct((n, c_out, hw), x.dtype),
        grid_spec=pltpu.PrefetchScalarGridSpec(
            num_scalar_prefetch=0,
            grid=(n, n_hw_tiles),
            in_specs=[
                pl.BlockSpec((pl.Squeezed(), c_out, 1), lambda i, j: (i, 0, 0)),
            ],
            out_specs=pl.BlockSpec((pl.Squeezed(), c_out, tile_hw),
                                   lambda i, j: (i, 0, j)),
        ),
        compiler_params=pltpu.CompilerParams(
            dimension_semantics=("parallel", "parallel"),
            vmem_limit_bytes=vmem_limit2,
        ),
        cost_estimate=cost2,
    )(z)

    return out3.reshape(n, c_out, h, w)


# ----------------------------------------------------------------------------- reference
def inner_pooling_ref(x, conv_weight, bn_gamma, bn_beta, bn_mean, bn_var, eps=1e-5):
    """Pure-JAX reference for correctness checking (eval-mode BN)."""
    c_out = conv_weight.shape[0]
    pooled = jnp.mean(x.astype(jnp.float32), axis=(2, 3))     # (N, Cin)
    y = pooled @ conv_weight.reshape(c_out, -1).astype(jnp.float32).T  # (N, Cout)
    scale = bn_gamma / jnp.sqrt(bn_var + eps)
    shift = bn_beta - bn_mean * scale
    z = jnp.maximum(y * scale + shift, 0.0)                   # (N, Cout)
    n, _, h, w = x.shape
    return jnp.broadcast_to(z[:, :, None, None], (n, c_out, h, w)).astype(x.dtype)


if __name__ == "__main__":
    key = jax.random.PRNGKey(0)
    k_x, k_w, k_g, k_b, k_m, k_v = jax.random.split(key, 6)

    N, C_IN, C_OUT, H, W = 2, 4, 8, 16, 16

    x = jax.random.normal(k_x, (N, C_IN, H, W), dtype=jnp.float32)
    conv_weight = jax.random.normal(k_w, (C_OUT, C_IN), dtype=jnp.float32) * 0.1
    bn_gamma = 1.0 + 0.1 * jax.random.normal(k_g, (C_OUT,), dtype=jnp.float32)
    bn_beta = 0.1 * jax.random.normal(k_b, (C_OUT,), dtype=jnp.float32)
    bn_mean = 0.05 * jax.random.normal(k_m, (C_OUT,), dtype=jnp.float32)
    bn_var = 1.0 + 0.1 * jnp.abs(jax.random.normal(k_v, (C_OUT,), dtype=jnp.float32))

    out = inner_pooling(x, conv_weight, bn_gamma, bn_beta, bn_mean, bn_var)
    out = jax.block_until_ready(out)

    ref = inner_pooling_ref(x, conv_weight, bn_gamma, bn_beta, bn_mean, bn_var)
    assert out.shape == (N, C_OUT, H, W)
    assert jnp.allclose(out, ref, atol=1e-5, rtol=1e-5), "mismatch vs reference"

    print("KERNEL_OK")
</pallas_src>

<mosaic_0001>
module attributes {stable_mosaic.version = 11 : i64} {
  func.func @_pool_conv_bn_kernel(%arg0: i32, %arg1: i32, %arg2: memref<1x4x256xf32, #tpu.memory_space<vmem>>, %arg3: memref<8x4xf32, #tpu.memory_space<vmem>>, %arg4: memref<8x1xf32, #tpu.memory_space<vmem>>, %arg5: memref<8x1xf32, #tpu.memory_space<vmem>>, %arg6: memref<1x8x1xf32, #tpu.memory_space<vmem>>, %arg7: memref<4x1xf32, #tpu.memory_space<vmem>>) attributes {dimension_semantics = [#tpu.dimension_semantics<parallel>, #tpu.dimension_semantics<arbitrary>], iteration_bounds = array<i64: 2, 1>, scalar_prefetch = 0 : i64, scratch_operands = 1 : i64, tpu.core_type = #tpu.core_type<tc>, window_params = [{transform_indices = @transform_0, window_bounds = array<i64: 1, 4, 256>}, {pipeline_mode = #tpu.pipeline_mode<synchronous>, transform_indices = @transform_1, window_bounds = array<i64: 8, 4>}, {pipeline_mode = #tpu.pipeline_mode<synchronous>, transform_indices = @transform_2, window_bounds = array<i64: 8, 1>}, {pipeline_mode = #tpu.pipeline_mode<synchronous>, transform_indices = @transform_3, window_bounds = array<i64: 8, 1>}, {transform_indices = @transform_4, window_bounds = array<i64: 1, 8, 1>}]} {
    %c0 = arith.constant 0 : index
    %c0_0 = arith.constant 0 : index
    %c0_1 = arith.constant 0 : index
    %0 = vector.load %arg2[%c0, %c0_0, %c0_1] : memref<1x4x256xf32, #tpu.memory_space<vmem>>, vector<1x4x256xf32>
    %1 = vector.shape_cast %0 : vector<1x4x256xf32> to vector<4x256xf32>
    %cst = arith.constant dense<0.000000e+00> : vector<4xf32>
    %2 = vector.multi_reduction <add>, %1, %cst [1] : vector<4x256xf32> to vector<4xf32>
    %3 = vector.shape_cast %2 : vector<4xf32> to vector<4x1xf32>
    %c4_i32 = arith.constant 4 : i32
    %4 = arith.muli %arg1, %c4_i32 : i32
    %5 = arith.index_cast %4 : i32 to index
    %c0_2 = arith.constant 0 : index
    %6 = vector.load %arg7[%5, %c0_2] : memref<4x1xf32, #tpu.memory_space<vmem>>, vector<4x1xf32>
    tpu.vector_store %arg7[%5, %c0_2], %3 {strides = array<i32>} : memref<4x1xf32, #tpu.memory_space<vmem>>, vector<4x1xf32>,
    %c0_i32 = arith.constant 0 : i32
    %7 = arith.cmpi eq, %arg1, %c0_i32 : i32
    %8 = arith.extui %7 : i1 to i32
    %c0_i32_3 = arith.constant 0 : i32
    %9 = arith.cmpi ne, %8, %c0_i32_3 : i32
    scf.if %9 {
      %c0_4 = arith.constant 0 : index
      %c0_5 = arith.constant 0 : index
      %10 = vector.load %arg7[%c0_4, %c0_5] : memref<4x1xf32, #tpu.memory_space<vmem>>, vector<4x1xf32>
      %c0_6 = arith.constant 0 : index
      %c0_7 = arith.constant 0 : index
      %11 = vector.load %arg3[%c0_6, %c0_7] : memref<8x4xf32, #tpu.memory_space<vmem>>, vector<8x4xf32>
      %cst_8 = arith.constant dense<0.000000e+00> : vector<8x1xf32>
      %12 = tpu.matmul %11, %10, %cst_8 {dimension_numbers = #tpu.dot_dimension_numbers<[1], [0], [0], [1], [0, 0, 1, 1], [], []>} : vector<8x4xf32>, vector<4x1xf32>, vector<8x1xf32> -> vector<8x1xf32>
      %c0_9 = arith.constant 0 : index
      %c0_10 = arith.constant 0 : index
      %13 = vector.load %arg4[%c0_9, %c0_10] : memref<8x1xf32, #tpu.memory_space<vmem>>, vector<8x1xf32>
      %14 = arith.mulf %12, %13 : vector<8x1xf32>
      %c0_11 = arith.constant 0 : index
      %c0_12 = arith.constant 0 : index
      %15 = vector.load %arg5[%c0_11, %c0_12] : memref<8x1xf32, #tpu.memory_space<vmem>>, vector<8x1xf32>
      %16 = arith.addf %14, %15 : vector<8x1xf32>
      %cst_13 = arith.constant 0.000000e+00 : f32
      %17 = vector.broadcast %cst_13 : f32 to vector<8x1xf32>
      %18 = arith.maximumf %16, %17 : vector<8x1xf32>
      %c0_14 = arith.constant 0 : index
      %c0_15 = arith.constant 0 : index
      %c0_16 = arith.constant 0 : index
      %19 = vector.load %arg6[%c0_14, %c0_15, %c0_16] : memref<1x8x1xf32, #tpu.memory_space<vmem>>, vector<1x8x1xf32>
      %20 = vector.shape_cast %19 : vector<1x8x1xf32> to vector<8x1xf32>
      %21 = vector.shape_cast %18 : vector<8x1xf32> to vector<1x8x1xf32>
      tpu.vector_store %arg6[%c0_14, %c0_15, %c0_16], %21 {strides = array<i32>} : memref<1x8x1xf32, #tpu.memory_space<vmem>>, vector<1x8x1xf32>,
    } else {
    }
    return
  }
  func.func @transform_0(%arg0: i32, %arg1: i32) -> (i32, i32, i32) {
    %c0_i32 = arith.constant 0 : i32
    %c0_i32_0 = arith.constant 0 : i32
    return %arg0, %arg1, %c0_i32 : i32, i32, i32
  }
  func.func @transform_1(%arg0: i32, %arg1: i32) -> (i32, i32) {
    %c0_i32 = arith.constant 0 : i32
    %c0_i32_0 = arith.constant 0 : i32
    %c0_i32_1 = arith.constant 0 : i32
    return %c0_i32, %c0_i32_0 : i32, i32
  }
  func.func @transform_2(%arg0: i32, %arg1: i32) -> (i32, i32) {
    %c0_i32 = arith.constant 0 : i32
    %c0_i32_0 = arith.constant 0 : i32
    %c0_i32_1 = arith.constant 0 : i32
    return %c0_i32, %c0_i32_0 : i32, i32
  }
  func.func @transform_3(%arg0: i32, %arg1: i32) -> (i32, i32) {
    %c0_i32 = arith.constant 0 : i32
    %c0_i32_0 = arith.constant 0 : i32
    %c0_i32_1 = arith.constant 0 : i32
    return %c0_i32, %c0_i32_0 : i32, i32
  }
  func.func @transform_4(%arg0: i32, %arg1: i32) -> (i32, i32, i32) {
    %c0_i32 = arith.constant 0 : i32
    %c0_i32_0 = arith.constant 0 : i32
    %c0_i32_1 = arith.constant 0 : i32
    return %arg0, %c0_i32, %c0_i32_0 : i32, i32, i32
  }
}

</mosaic_0001>

<bundles_post_ra>
// kernel: tpu_custom_call.1
= control target key start
LH: loop header
LB: loop body
LE: loop exit
PB: predicated region body
PF: predicated region fallthrough
CT: control target
= control target key end

     0   :  { %s496_s15 = smov 0   ;;  %s498_s16 = smov 0   ;;  %s544_s0 = inlined_call_operand.vmem [shape: f32[2,4,256], index: 0, kind: input, shape index: {}]   ;;  %s545_s1 = inlined_call_operand.vmem [shape: f32[8,4], index: 1, kind: input, shape index: {}]   ;;  %s546_s2 = inlined_call_operand.vmem [shape: f32[8,1], index: 2, kind: input, shape index: {}]   ;;  %s547_s3 = inlined_call_operand.vmem [shape: f32[8,1], index: 3, kind: input, shape index: {}]   ;;  %s548_s4 = inlined_call_operand.vmem [shape: f32[2,8,1], index: 4, kind: output, shape index: {}]  }
   0x1   :  { %s500_s17 = smov 0  }
   0x2 LB: > { %s26_s18 = sadd.s32 1, %s463_s16  ;;  %p402_p0 = scmp.ge.s32.totalorder %s467_s17, 1  ;;  %s467_s17 = sphi %s500_s17, %s14_s17   ;;  %s463_s16 = sphi %s498_s16, %s550_s16   ;;  %s459_s15 = sphi %s496_s15, %s549_s15  }
   0x3   : > { %p28_p1 = scmp.ge.s32.totalorder %s26_s18, 2  ;;  %p180_p2 = scmp.lt.s32.totalorder %s467_s17, 3 }
   0x5   : > { %s552_s18 = smov (%p28_p1, %s26_s18), 0  ;;  %p181_p3 = pnand %p402_p0, %p180_p2 }
   0x6   : > { %p209_p4 = scmp.lt.s32.totalorder (!%p181_p3), %s459_s15, 1 }
   0x7   : > { %184 = sbr.rel (%p181_p3) target bundleno = 368 (0x170), region = 36 }
   0xc   : > { %s554_s15 = smov (!%p209_p4, %s459_s15), 1  ;;  %vm226_vm0 = vcmask 1043456   ;;  %v469_v5 = vmov 0.0   ;;  %vm470_vm1 = vmmov 0   ;;  %vm234_vm2 = vcmask 3072   ;;  %v241_v7 = vld [vmem:[%s545_s1] sm:$0xff] }
   0xd   : > { %s410_s19 = sshll.u32 %s554_s15, 3  ;;  %413 = vmatprep.subr.mxu0 %v469_v5  ;;  %415 = vmatprep.mubr.msk.f32.mxu0 %vm470_vm1, %v469_v5  ;;  %vm242_vm3 = vcmask 31744   ;;  %v319_v9 = vld [vmem:[%s546_s2] sm:$0xff]  ;;  %vm324_vm4 = vcmask 7168  }
   0xe   : > { %s217_s22 = scalar_lea.vmem %s544_s0, %s410_s19  ;;  %v321_v11 = vld [vmem:[%s547_s3] sm:$0xff]  ;;  %s221_s5 = scalar_lea.vmem %s548_s4, %s410_s19 }
   0xf   : > { %v222_v0 = vld [vmem:[%s217_s22] sm:$0xff] }
  0x10   : > { %v224_v1 = vcombine.high %v222_v0, %v222_v0  ;;  %v227_v2 = vsel %vm226_vm0, %v222_v0, 0.0 }
  0x12   : > { %v228_v3 = vsel %vm226_vm0, %v224_v1, 0.0 }
  0x13   : > { %v229_v4 = vadd.f32 %v228_v3, %v227_v2 }
  0x15   : > { %230 = vadd.xlane.f32.xlu0 %v229_v4 }
  0x9e   : > { %v231_v6 = vpop.xlane.xlu0 %230 }
  0x9f   : > { %235 = vst.msk [vmem:[#allocation2] sm:$0xf] %vm234_vm2, %v231_v6 }
  0xa6   : > { %v240_v8 = vld [vmem:[#allocation2] sm:$0xf] }
  0xa7   : > { %414 = vmatpush3.msk.msra.mxu0 %vm226_vm0, %v240_v8 }
  0xa8   : > { %416 = vmatmul.mubr.msk.f32.vlgmr.msra.gmra.mxu0 %vm242_vm3, %v241_v7 }
 0x168   : > { %v315_v10 = vpop.f32.mrf.mxu0 }
 0x169   : > { %v320_v12 = vmul.f32 %v319_v9, %v315_v10 }
 0x16a   : > { %v417_v13 = vpop.f32.mrf.mxu0 }
 0x16b   : > { %v322_v14 = vadd.f32 %v321_v11, %v320_v12 }
 0x16d   : > { %v323_v15 = vmax.f32 %v322_v14, 0.0 }
 0x16f   : > { %325 = vst.msk [vmem:[%s221_s5] sm:$0xff] %vm324_vm4, %v323_v15 }
 0x170 PF: > { %s14_s17 = sadd.s32 1, %s467_s17   ;;  %s549_s15 = smov %s463_s16 }
 0x171   : > { %p11_p5 = scmp.ge.s32.totalorder %s14_s17, 4   ;;  %s550_s16 = smov %s552_s18 }
 0x173   :  { %13 = sbr.rel (!%p11_p5) target bundleno = 2 (0x2), region = 71 }

</bundles_post_ra>
